<compile_context>
chip_gen: v7x
topology: tpu7x:2x2x1
jax: 0.10.0
libtpu: 0.0.40
codegen_flags: <defaults>
</compile_context>

<pallas_src>
import jax
import jax.numpy as jnp
import numpy as np
from jax.experimental import pallas as pl
from jax.experimental.pallas import tpu as pltpu


# --------------------------------------------------------------------------
# Pallas kernel: diffeq forward + Hutchinson divergence, fully fused
# --------------------------------------------------------------------------
def _odefunc_kernel(t_ref, xe_ref, wb_ref, bu_ref, w2_ref, b2_ref,
                    dx_ref, neg_div_ref):
    # t lives in SMEM (scalar path) — no padded VMEM tile / lane extract.
    t = t_ref[0]

    B = dx_ref.shape[0]          # batch rows of the real state
    H = w2_ref.shape[0]          # hidden width of the diffeq MLP

    # Stacked LHS [x; e] (2B, D) against packed RHS Wb = [W1 | W2^T] (D, 2H):
    # a single MXU pass yields
    #   z[:B, :H] = x @ W1     z[B:, :H] = e @ W1     z[B:, H:] = e @ W2^T
    # (z[:B, H:] = x @ W2^T rides along for free and is ignored.)
    xe = xe_ref[...].astype(jnp.bfloat16)                               # (2B, D)
    z = jnp.dot(xe, wb_ref[...], preferred_element_type=jnp.float32)    # (2B, 2H) f32

    xw1 = z[:B, :H]                                                     # (B, H) x@W1
    he = z[B:, :H]                                                      # (B, H) e@W1
    v = z[B:, H:]                                                       # (B, H) e@W2^T

    # ---- diffeq forward: dx = tanh(x W1 + t u1 + b1) W2 + b2 (f32 elementwise)
    b1t = bu_ref[0:1, :] + t * bu_ref[1:2, :]                           # (1, H)
    a1 = jnp.tanh(xw1 + b1t)                                            # (B, H) f32
    dx = (jnp.dot(a1.astype(jnp.bfloat16), w2_ref[...],
                  preferred_element_type=jnp.float32)
          + b2_ref[...])                                                # (B, D) f32
    dx_ref[...] = dx.astype(dx_ref.dtype)

    # ---- divergence: e^T J e = sum_k (e W1)_k * (e W2^T)_k * (1 - a1_k^2)
    g = v * (1.0 - a1 * a1)                                             # (B, H) f32
    div = jnp.sum(g * he, axis=1, keepdims=True)                        # (B, 1)
    neg_div_ref[...] = (-div).astype(neg_div_ref.dtype)


@jax.jit
def _odefunc_call(t_arr, x_flat, e_flat, wb, bu, w2, b2):
    B, D = x_flat.shape
    xe = jnp.concatenate([x_flat, e_flat], axis=0)                      # (2B, D)

    vmem = lambda: pl.BlockSpec(memory_space=pltpu.MemorySpace.VMEM)
    smem = pl.BlockSpec(memory_space=pltpu.MemorySpace.SMEM)

    dx, neg_div = pl.pallas_call(
        _odefunc_kernel,
        out_shape=(jax.ShapeDtypeStruct((B, D), jnp.float32),
                   jax.ShapeDtypeStruct((B, 1), jnp.float32)),
        in_specs=[smem,                       # t            (1,)    SMEM scalar
                  vmem(),                     # xe           (2B,D)  f32
                  vmem(),                     # Wb=[W1|W2^T] (D,2H)  bf16
                  vmem(),                     # [b1;u1]      (2,H)   f32
                  vmem(),                     # W2           (H,D)   bf16
                  vmem()],                    # b2           (1,D)   f32
        out_specs=(vmem(), vmem()),
    )(t_arr, xe, wb, bu, w2, b2)
    return dx, neg_div[:, 0]


# --------------------------------------------------------------------------
# ODEfunc wrapper (mirrors the PyTorch module's stateful behaviour)
# --------------------------------------------------------------------------
class ODEfunc:
    def __init__(self, params):
        w1, b1, u1, w2, b2 = params
        self.params = params
        # One-time host-side weight packing: pre-transpose W2, concat with W1,
        # cast to bf16. Removes all in-kernel transposes and halves weight DMA
        # relative to f32 weights.
        self.wb = jnp.concatenate([w1, w2.T], axis=1).astype(jnp.bfloat16)  # (D, 2H)
        self.w2_bf16 = w2.astype(jnp.bfloat16)                              # (H, D)
        self.bu = jnp.concatenate([b1, u1], axis=0).astype(jnp.float32)     # (2, H)
        self.b2 = b2.astype(jnp.float32)                                    # (1, D)
        self._num_evals = 0.0
        self._e = None

    def before_odeint(self):
        self._e = None
        self._num_evals = 0.0

    def num_evals(self):
        return self._num_evals

    def forward(self, t, states, noise_key):
        assert len(states) == 2, 'need x(t) and logpx(t)'
        x = states[0]
        self._num_evals += 1
        B = x.shape[0]
        x_flat = x.reshape(B, -1)
        if self._e is None:
            # torch.randn_like(x): fixed noise, drawn once per odeint call
            self._e = jax.random.normal(noise_key, x_flat.shape, dtype=x_flat.dtype)
        t_arr = jnp.asarray([t], dtype=jnp.float32)
        dx_flat, neg_div = _odefunc_call(t_arr, x_flat, self._e,
                                         self.wb, self.bu, self.w2_bf16, self.b2)
        return dx_flat.reshape(x.shape), neg_div


# --------------------------------------------------------------------------
# Pure-JAX f32 reference (autodiff VJP — same as torch.autograd.grad with e)
# --------------------------------------------------------------------------
def _diffeq_ref(t, x_flat, w1, b1, u1, w2, b2):
    return jnp.tanh(x_flat @ w1 + t * u1 + b1) @ w2 + b2


def _odefunc_ref(t, x_flat, e_flat, w1, b1, u1, w2, b2):
    dx, vjp_fn = jax.vjp(lambda xx: _diffeq_ref(t, xx, w1, b1, u1, w2, b2), x_flat)
    e_dzdx = vjp_fn(e_flat)[0]
    div = jnp.sum(e_dzdx * e_flat, axis=1)
    return dx, -div


# --------------------------------------------------------------------------
if __name__ == "__main__":
    key = jax.random.PRNGKey(0)
    k_x, k_logp, k_e, k_w1, k_b1, k_u1, k_w2, k_b2 = jax.random.split(key, 8)

    B, C, Hs, Ws = 2, 4, 16, 16           # NCHW state shape
    D = C * Hs * Ws                       # 1024
    Hh = 128                              # diffeq hidden width

    # deterministic synthetic parameters for the diffeq
    w1 = jax.random.normal(k_w1, (D, Hh), jnp.float32) * (1.0 / np.sqrt(D))
    b1 = jax.random.normal(k_b1, (1, Hh), jnp.float32) * 0.1
    u1 = jax.random.normal(k_u1, (1, Hh), jnp.float32) * 0.1   # time conditioning
    w2 = jax.random.normal(k_w2, (Hh, D), jnp.float32) * (1.0 / np.sqrt(Hh))
    b2 = jax.random.normal(k_b2, (1, D), jnp.float32) * 0.1

    x = jax.random.normal(k_x, (B, C, Hs, Ws), jnp.float32)
    logpx = jnp.zeros((B, 1), jnp.float32)
    t = 0.35

    odefunc = ODEfunc((w1, b1, u1, w2, b2))
    odefunc.before_odeint()

    dx, neg_div = odefunc.forward(t, (x, logpx), noise_key=k_e)
    dx = jax.block_until_ready(dx)
    neg_div = jax.block_until_ready(neg_div)

    # Reference check against the pure-f32 autodiff reference. Tolerances are
    # sized for the bf16 MXU operands (~2^-9 relative rounding accumulated over
    # the D=1024 contraction); the single-probe Hutchinson estimator's own
    # statistical noise is far larger than this in actual CNF use. Any
    # structural bug (wrong slice / transpose / sign) produces O(1) errors.
    dx_ref, neg_div_ref = _odefunc_ref(t, x.reshape(B, -1), odefunc._e,
                                       w1, b1, u1, w2, b2)
    assert dx.shape == x.shape
    assert neg_div.shape == (B,)
    np.testing.assert_allclose(np.asarray(dx).reshape(B, -1),
                               np.asarray(dx_ref), rtol=5e-2, atol=5e-2)
    np.testing.assert_allclose(np.asarray(neg_div),
                               np.asarray(neg_div_ref), rtol=5e-2, atol=1.0)
    assert odefunc.num_evals() == 1.0

    print("KERNEL_OK")
</pallas_src>

<mosaic_0001>
module attributes {stable_mosaic.version = 11 : i64} {
  func.func @_odefunc_kernel(%arg0: memref<1xf32, #tpu.memory_space<smem>>, %arg1: memref<4x1024xf32, #tpu.memory_space<vmem>>, %arg2: memref<1024x256xbf16, #tpu.memory_space<vmem>>, %arg3: memref<2x128xf32, #tpu.memory_space<vmem>>, %arg4: memref<128x1024xbf16, #tpu.memory_space<vmem>>, %arg5: memref<1x1024xf32, #tpu.memory_space<vmem>>, %arg6: memref<2x1024xf32, #tpu.memory_space<vmem>>, %arg7: memref<2x1xf32, #tpu.memory_space<vmem>>) attributes {dimension_semantics = [], scalar_prefetch = 0 : i64, scratch_operands = 0 : i64, tpu.core_type = #tpu.core_type<tc>} {
    %c0 = arith.constant 0 : index
    %0 = memref.load %arg0[%c0] : memref<1xf32, #tpu.memory_space<smem>>
    %c0_0 = arith.constant 0 : index
    %c0_1 = arith.constant 0 : index
    %1 = vector.load %arg1[%c0_0, %c0_1] : memref<4x1024xf32, #tpu.memory_space<vmem>>, vector<4x1024xf32>
    %2 = arith.truncf %1 : vector<4x1024xf32> to vector<4x1024xbf16>
    %c0_2 = arith.constant 0 : index
    %c0_3 = arith.constant 0 : index
    %3 = vector.load %arg2[%c0_2, %c0_3] : memref<1024x256xbf16, #tpu.memory_space<vmem>>, vector<1024x256xbf16>
    %cst = arith.constant dense<0.000000e+00> : vector<4x256xf32>
    %4 = tpu.matmul %2, %3, %cst {dimension_numbers = #tpu.dot_dimension_numbers<[1], [0], [0], [1], [0, 0, 1, 1], [], []>} : vector<4x1024xbf16>, vector<1024x256xbf16>, vector<4x256xf32> -> vector<4x256xf32>
    %5 = vector.extract_strided_slice %4 {offsets = [0, 0], sizes = [2, 128], strides = [1, 1]} : vector<4x256xf32> to vector<2x128xf32>
    %6 = vector.extract_strided_slice %4 {offsets = [2, 0], sizes = [2, 128], strides = [1, 1]} : vector<4x256xf32> to vector<2x128xf32>
    %7 = vector.extract_strided_slice %4 {offsets = [2, 128], sizes = [2, 128], strides = [1, 1]} : vector<4x256xf32> to vector<2x128xf32>
    %c0_4 = arith.constant 0 : index
    %c0_5 = arith.constant 0 : index
    %8 = vector.load %arg3[%c0_4, %c0_5] : memref<2x128xf32, #tpu.memory_space<vmem>>, vector<1x128xf32>
    %c1 = arith.constant 1 : index
    %c0_6 = arith.constant 0 : index
    %9 = vector.load %arg3[%c1, %c0_6] : memref<2x128xf32, #tpu.memory_space<vmem>>, vector<1x128xf32>
    %10 = vector.broadcast %0 : f32 to vector<1x128xf32>
    %11 = arith.mulf %10, %9 : vector<1x128xf32>
    %12 = arith.addf %8, %11 : vector<1x128xf32>
    %13 = vector.broadcast %12 : vector<1x128xf32> to vector<2x128xf32>
    %14 = arith.addf %5, %13 : vector<2x128xf32>
    %15 = math.tanh %14 : vector<2x128xf32>
    %16 = arith.truncf %15 : vector<2x128xf32> to vector<2x128xbf16>
    %c0_7 = arith.constant 0 : index
    %c0_8 = arith.constant 0 : index
    %17 = vector.load %arg4[%c0_7, %c0_8] : memref<128x1024xbf16, #tpu.memory_space<vmem>>, vector<128x1024xbf16>
    %cst_9 = arith.constant dense<0.000000e+00> : vector<2x1024xf32>
    %18 = tpu.matmul %16, %17, %cst_9 {dimension_numbers = #tpu.dot_dimension_numbers<[1], [0], [0], [1], [0, 0, 1, 1], [], []>} : vector<2x128xbf16>, vector<128x1024xbf16>, vector<2x1024xf32> -> vector<2x1024xf32>
    %c0_10 = arith.constant 0 : index
    %c0_11 = arith.constant 0 : index
    %19 = vector.load %arg5[%c0_10, %c0_11] : memref<1x1024xf32, #tpu.memory_space<vmem>>, vector<1x1024xf32>
    %20 = vector.broadcast %19 : vector<1x1024xf32> to vector<2x1024xf32>
    %21 = arith.addf %18, %20 : vector<2x1024xf32>
    %c0_12 = arith.constant 0 : index
    %c0_13 = arith.constant 0 : index
    %22 = vector.load %arg6[%c0_12, %c0_13] : memref<2x1024xf32, #tpu.memory_space<vmem>>, vector<2x1024xf32>
    tpu.vector_store %arg6[%c0_12, %c0_13], %21 {strides = array<i32>} : memref<2x1024xf32, #tpu.memory_space<vmem>>, vector<2x1024xf32>,
    %23 = arith.mulf %15, %15 : vector<2x128xf32>
    %cst_14 = arith.constant 1.000000e+00 : f32
    %24 = vector.broadcast %cst_14 : f32 to vector<2x128xf32>
    %25 = arith.subf %24, %23 : vector<2x128xf32>
    %26 = arith.mulf %7, %25 : vector<2x128xf32>
    %27 = arith.mulf %26, %6 : vector<2x128xf32>
    %cst_15 = arith.constant dense<0.000000e+00> : vector<2xf32>
    %28 = vector.multi_reduction <add>, %27, %cst_15 [1] : vector<2x128xf32> to vector<2xf32>
    %29 = vector.shape_cast %28 : vector<2xf32> to vector<2x1xf32>
    %cst_16 = arith.constant 0.000000e+00 : f32
    %30 = vector.broadcast %cst_16 : f32 to vector<2x1xf32>
    %31 = arith.subf %30, %29 : vector<2x1xf32>
    %c0_17 = arith.constant 0 : index
    %c0_18 = arith.constant 0 : index
    %32 = vector.load %arg7[%c0_17, %c0_18] : memref<2x1xf32, #tpu.memory_space<vmem>>, vector<2x1xf32>
    tpu.vector_store %arg7[%c0_17, %c0_18], %31 {strides = array<i32>} : memref<2x1xf32, #tpu.memory_space<vmem>>, vector<2x1xf32>,
    return
  }
}

</mosaic_0001>

<bundles_post_ra>
// kernel: _odefunc_call.1
= control target key start
LH: loop header
LB: loop body
LE: loop exit
PB: predicated region body
PF: predicated region fallthrough
CT: control target
= control target key end

     0   :  { %14 = vsyncpa [#allocation4], 0  ;;  %s2331_s0 = inlined_call_operand.<no memory space> [shape: f32[1], index: 0, kind: input, shape index: {}]   ;;  %s2332_s1 = inlined_call_operand.vmem [shape: f32[4,1024], index: 1, kind: input, shape index: {}]   ;;  %s2333_s2 = inlined_call_operand.hbm [shape: bf16[1024,256], index: 2, kind: input, shape index: {}]   ;;  %s2334_s3 = inlined_call_operand.vmem [shape: f32[2,128], index: 3, kind: input, shape index: {}]   ;;  %s2335_s4 = inlined_call_operand.hbm [shape: bf16[128,1024], index: 4, kind: input, shape index: {}]   ;;  %s2336_s5 = inlined_call_operand.vmem [shape: f32[1,1024], index: 5, kind: input, shape index: {}]   ;;  %s2337_s6 = inlined_call_operand.hbm [shape: f32[2,1024], index: 6, kind: output, shape index: {0}]   ;;  %s2338_s7 = inlined_call_operand.vmem [shape: f32[2,1], index: 7, kind: output, shape index: {1}]  }
   0x1   :  { %15 = vsyncpa [#allocation7], 0 }
   0x2   :  { %16 = vsyncpa [#allocation5], 0  ;;  %s2176_s24 = smov [#allocation3]   ;;  %s2104_s28 = scalar_lea.hbm %s2333_s2, 16384 }
   0x3   :  { %s26_s25 = sshll.u32 %s2176_s24, 4  ;;  %p2105_p0 = scmp.ne.s32.totalorder %s2333_s2, %s2104_s28  ;;  %s27_s25 = int_to_ptr.vmem [resolvable:$true] %s26_s25 }
   0x4   :  { %p2108_p1 = scmp.lt.u32.totalorder %s2104_s28, %s2333_s2 }
   0x6   :  { %p2110_p2 = pnand %p2108_p1, %p2105_p0 }
   0x8   :  { %2113 = shalt.err (!%p2110_p2)
}
   0x9   :  { %s2114_s10 = scalar_lea.vmem %s27_s25, 16384  ;;  %p2119_p4 = scmp.lt.s32.totalorder %s27_s25, %s27_s25 }
   0xa   :  { %p2115_p3 = scmp.ne.s32.totalorder %s27_s25, %s2114_s10  ;;  %p2120_p5 = scmp.lt.s32.totalorder %s2114_s10, %s2114_s10 }
   0xc   :  { %p2121_p6 = por %p2120_p5, %p2119_p4 }
   0xe   :  { %p2122_p7 = pnand %p2121_p6, %p2115_p3 }
  0x10   :  { %2125 = shalt.err (!%p2122_p7)
}
  0x11   :  { %s2177_s11 = smov 128   ;;  %s2178_s12 = smov 8  }
  0x12   :  { %32 = dma.hbm_to_vmem [thread:$0]  %s2333_s2, 16384, %s27_s25, [#allocation4], %s2177_s11, %s2177_s11, %s2178_s12  }
  0x13   :  { %s2179_s15 = smov [#allocation6]   ;;  %s2126_s19 = scalar_lea.hbm %s2335_s4, 8192 }
  0x14   :  { %s40_s16 = sshll.u32 %s2179_s15, 4  ;;  %p2127_p8 = scmp.ne.s32.totalorder %s2335_s4, %s2126_s19  ;;  %s41_s16 = int_to_ptr.vmem [resolvable:$true] %s40_s16 }
  0x15   :  { %p2130_p9 = scmp.lt.u32.totalorder %s2126_s19, %s2335_s4 }
  0x17   :  { %p2132_p10 = pnand %p2130_p9, %p2127_p8 }
  0x19   :  { %2135 = shalt.err (!%p2132_p10)
}
  0x1a   :  { %s2136_s24 = scalar_lea.vmem %s41_s16, 8192  ;;  %p2141_p12 = scmp.lt.s32.totalorder %s41_s16, %s41_s16 }
  0x1b   :  { %p2137_p11 = scmp.ne.s32.totalorder %s41_s16, %s2136_s24  ;;  %p2142_p13 = scmp.lt.s32.totalorder %s2136_s24, %s2136_s24 }
  0x1d   :  { %p2143_p0 = por %p2142_p13, %p2141_p12 }
  0x1f   :  { %p2144_p1 = pnand %p2143_p0, %p2137_p11 }
  0x21   :  { %2147 = shalt.err (!%p2144_p1)
}
  0x22   :  { %s2180_s2 = smov 512   ;;  %s2181_s25 = smov 32  }
  0x23   :  { %46 = dma.hbm_to_vmem [thread:$0]  %s2335_s4, 8192, %s41_s16, [#allocation7], %s2180_s2, %s2180_s2, %s2181_s25  }
  0x24   :  { %2170 = dma.done.wait [#allocation4], 16384  }
  0x25   :  { %2171 = vsyncadd [#allocation4], 4294950912 }
  0x26   :  { %2172 = dma.done.wait [#allocation7], 8192  }
  0x27   :  { %2173 = vsyncadd [#allocation7], 4294959104  ;;  %v1906_v0 = vld [vmem:[#allocation3 + $0x104] ss:$8 sps:$4 sm:$0xff]   ;;  %v1908_v1 = vld [vmem:[#allocation3 + $0x100] ss:$8 sps:$4 sm:$0xff]  }
  0x28   :  { %890 = vmatprep.subr.bf16.mxu0 %v1906_v0  ;;  %v1909_v2 = vld [vmem:[#allocation3 + $0x114] ss:$8 sps:$4 sm:$0xff]   ;;  %v1911_v3 = vld [vmem:[#allocation3 + $0x110] ss:$8 sps:$4 sm:$0xff]   ;;  %v1912_v4 = vld [vmem:[#allocation3 + $0x124] ss:$8 sps:$4 sm:$0xff]  }
  0x29   :  { %891 = vmatpush1.bf16.msra.mxu0 %v1908_v1  ;;  %v1914_v5 = vld [vmem:[#allocation3 + $0x120] ss:$8 sps:$4 sm:$0xff]   ;;  %v1915_v6 = vld [vmem:[#allocation3 + $0x134] ss:$8 sps:$4 sm:$0xff]   ;;  %v1917_v7 = vld [vmem:[#allocation3 + $0x130] ss:$8 sps:$4 sm:$0xff]  }
  0x2a   :  { %892 = vmatprep.subr.bf16.mxu0 %v1909_v2  ;;  %v1918_v8 = vld [vmem:[#allocation3 + $0x144] ss:$8 sps:$4 sm:$0xff]   ;;  %v1920_v9 = vld [vmem:[#allocation3 + $0x140] ss:$8 sps:$4 sm:$0xff]   ;;  %v1921_v10 = vld [vmem:[#allocation3 + $0x154] ss:$8 sps:$4 sm:$0xff]  }
  0x2b   :  { %v1923_v11 = vld [vmem:[#allocation3 + $0x150] ss:$8 sps:$4 sm:$0xff]   ;;  %v1924_v12 = vld [vmem:[#allocation3 + $0x164] ss:$8 sps:$4 sm:$0xff]   ;;  %v1926_v15 = vld [vmem:[#allocation3 + $0x160] ss:$8 sps:$4 sm:$0xff]  }
  0x2c   :  { %v2252_v13 = vld [vmem:[%s2332_s1 + $0x8] sm:$0xff]  ;;  %v1927_v16 = vld [vmem:[#allocation3 + $0x174] ss:$8 sps:$4 sm:$0xff]   ;;  %v1929_v18 = vld [vmem:[#allocation3 + $0x170] ss:$8 sps:$4 sm:$0xff]   ;;  %vm1668_vm0 = vcmask 1043458  }
  0x2d   :  { %893 = vmatpush1.bf16.msra.mxu0 %v1911_v3  ;;  %v66_v14 = vcombine.high %v2252_v13, %v2252_v13  ;;  %v1930_v19 = vld [vmem:[#allocation3 + $0x184] ss:$8 sps:$4 sm:$0xff]   ;;  %v1932_v20 = vld [vmem:[#allocation3 + $0x180] ss:$8 sps:$4 sm:$0xff]   ;;  %v1933_v21 = vld [vmem:[#allocation3 + $0x194] ss:$8 sps:$4 sm:$0xff]   ;;  %v75_v49 = vpack.c.bf16 %v2252_v13, %v2252_v13 }
  0x2e   :  { %894 = vmatprep.subr.bf16.mxu0 %v1912_v4  ;;  %v1935_v22 = vld [vmem:[#allocation3 + $0x190] ss:$8 sps:$4 sm:$0xff]   ;;  %v1936_v23 = vld [vmem:[#allocation3 + $0x1a4] ss:$8 sps:$4 sm:$0xff]   ;;  %v1938_v24 = vld [vmem:[#allocation3 + $0x1a0] ss:$8 sps:$4 sm:$0xff]  }
  0x2f   :  { %v76_v17 = vpack.c.bf16 %v66_v14, %v66_v14  ;;  %v1939_v25 = vld [vmem:[#allocation3 + $0x1b4] ss:$8 sps:$4 sm:$0xff]   ;;  %v1941_v26 = vld [vmem:[#allocation3 + $0x1b0] ss:$8 sps:$4 sm:$0xff]   ;;  %v2003_v27 = vld [vmem:[#allocation3 + $0x4] ss:$8 sps:$4 sm:$0xff]  }
  0x30   :  { %v1942_v28 = vld [vmem:[#allocation3 + $0x1c4] ss:$8 sps:$4 sm:$0xff]   ;;  %v2005_v29 = vld [vmem:[#allocation3] ss:$8 sps:$4 sm:$0xff]   ;;  %849 = vmatprep.subr.bf16.mxu1 %v2003_v27  ;;  %v2010_v31 = vld [vmem:[#allocation3 + $0x14] ss:$8 sps:$4 sm:$0xff]  }
  0x31   :  { %895 = vmatpush1.bf16.msra.mxu0 %v1914_v5  ;;  %922 = vmatprep.mubr.bf16.mxu0 %v76_v17  ;;  %v1944_v30 = vld [vmem:[#allocation3 + $0x1c0] ss:$8 sps:$4 sm:$0xff]   ;;  %v2012_v32 = vld [vmem:[#allocation3 + $0x10] ss:$8 sps:$4 sm:$0xff]   ;;  %v1945_v33 = vld [vmem:[#allocation3 + $0x1d4] ss:$8 sps:$4 sm:$0xff]  }
  0x32   :  { %896 = vmatprep.subr.bf16.mxu0 %v1915_v6  ;;  %850 = vmatpush1.bf16.msra.mxu1 %v2005_v29  ;;  %v2016_v34 = vld [vmem:[#allocation3 + $0x24] ss:$8 sps:$4 sm:$0xff]   ;;  %v2018_v35 = vld [vmem:[#allocation3 + $0x20] ss:$8 sps:$4 sm:$0xff]   ;;  %v1947_v36 = vld [vmem:[#allocation3 + $0x1d0] ss:$8 sps:$4 sm:$0xff]  }
  0x33   :  { %851 = vmatprep.subr.bf16.mxu1 %v2010_v31  ;;  %v1948_v37 = vld [vmem:[#allocation3 + $0x1e4] ss:$8 sps:$4 sm:$0xff]   ;;  %v2022_v38 = vld [vmem:[#allocation3 + $0x34] ss:$8 sps:$4 sm:$0xff]   ;;  %v1950_v39 = vld [vmem:[#allocation3 + $0x1e0] ss:$8 sps:$4 sm:$0xff]  }
  0x34   :  { %v2024_v40 = vld [vmem:[#allocation3 + $0x30] ss:$8 sps:$4 sm:$0xff]   ;;  %v2028_v41 = vld [vmem:[#allocation3 + $0x44] ss:$8 sps:$4 sm:$0xff]   ;;  %v1951_v42 = vld [vmem:[#allocation3 + $0x1f4] ss:$8 sps:$4 sm:$0xff]  }
  0x35   :  { %897 = vmatpush1.bf16.msra.mxu0 %v1917_v7  ;;  %v2259_v43 = vld [vmem:[%s2332_s1 + $0x10] sm:$0xff]  ;;  %v2030_v45 = vld [vmem:[#allocation3 + $0x40] ss:$8 sps:$4 sm:$0xff]   ;;  %v1957_v48 = vld [vmem:[#allocation3 + $0x204] ss:$8 sps:$4 sm:$0xff]   ;;  %vm1673_vm1 = vcmask 3074  }
  0x36   :  { %898 = vmatprep.subr.bf16.mxu0 %v1918_v8  ;;  %852 = vmatpush1.bf16.msra.mxu1 %v2012_v32  ;;  %v1953_v44 = vld [vmem:[#allocation3 + $0x1f0] ss:$8 sps:$4 sm:$0xff]   ;;  %v67_v46 = vcombine.high %v2259_v43, %v2259_v43  ;;  %v2034_v47 = vld [vmem:[#allocation3 + $0x54] ss:$8 sps:$4 sm:$0xff]   ;;  %v1955_v51 = vld [vmem:[#allocation3 + $0x200] ss:$8 sps:$4 sm:$0xff]  }
  0x37   :  { %853 = vmatprep.subr.bf16.mxu1 %v2016_v34  ;;  %v2036_v50 = vld [vmem:[#allocation3 + $0x50] ss:$8 sps:$4 sm:$0xff]   ;;  %v1960_v53 = vld [vmem:[#allocation3 + $0x214] ss:$8 sps:$4 sm:$0xff]   ;;  %v2040_v54 = vld [vmem:[#allocation3 + $0x64] ss:$8 sps:$4 sm:$0xff]  }
  0x38   :  { %v78_v52 = vpack.c.bf16 %v67_v46, %v67_v46  ;;  %v1958_v55 = vld [vmem:[#allocation3 + $0x210] ss:$8 sps:$4 sm:$0xff]   ;;  %v2042_v56 = vld [vmem:[#allocation3 + $0x60] ss:$8 sps:$4 sm:$0xff]   ;;  %v2046_v57 = vld [vmem:[#allocation3 + $0x74] ss:$8 sps:$4 sm:$0xff]  }
  0x39   :  { %899 = vmatpush1.bf16.msra.mxu0 %v1920_v9  ;;  %v1963_v58 = vld [vmem:[#allocation3 + $0x224] ss:$8 sps:$4 sm:$0xff]   ;;  %v1961_v59 = vld [vmem:[#allocation3 + $0x220] ss:$8 sps:$4 sm:$0xff]   ;;  %v2048_v60 = vld [vmem:[#allocation3 + $0x70] ss:$8 sps:$4 sm:$0xff]  }
  0x3a   :  { %900 = vmatprep.subr.bf16.mxu0 %v1921_v10  ;;  %854 = vmatpush1.bf16.msra.mxu1 %v2018_v35  ;;  %v2052_v61 = vld [vmem:[#allocation3 + $0x84] ss:$8 sps:$4 sm:$0xff]   ;;  %v1966_v62 = vld [vmem:[#allocation3 + $0x234] ss:$8 sps:$4 sm:$0xff]   ;;  %v1964_v63 = vld [vmem:[#allocation3 + $0x230] ss:$8 sps:$4 sm:$0xff]  }
  0x3b   :  { %855 = vmatprep.subr.bf16.mxu1 %v2022_v38  ;;  %v2054_v0 = vld [vmem:[#allocation3 + $0x80] ss:$8 sps:$4 sm:$0xff]   ;;  %v2058_v1 = vld [vmem:[#allocation3 + $0x94] ss:$8 sps:$4 sm:$0xff]   ;;  %v1969_v2 = vld [vmem:[#allocation3 + $0x244] ss:$8 sps:$4 sm:$0xff]  }
  0x3c   :  { %v1967_v3 = vld [vmem:[#allocation3 + $0x240] ss:$8 sps:$4 sm:$0xff]   ;;  %v2060_v4 = vld [vmem:[#allocation3 + $0x90] ss:$8 sps:$4 sm:$0xff]   ;;  %v2064_v5 = vld [vmem:[#allocation3 + $0xa4] ss:$8 sps:$4 sm:$0xff]  }
  0x3d   :  { %901 = vmatpush1.bf16.msra.mxu0 %v1923_v11  ;;  %v1972_v6 = vld [vmem:[#allocation3 + $0x254] ss:$8 sps:$4 sm:$0xff]   ;;  %v1970_v7 = vld [vmem:[#allocation3 + $0x250] ss:$8 sps:$4 sm:$0xff]   ;;  %v2066_v8 = vld [vmem:[#allocation3 + $0xa0] ss:$8 sps:$4 sm:$0xff]  }
  0x3e   :  { %902 = vmatprep.subr.bf16.mxu0 %v1924_v12  ;;  %856 = vmatpush1.bf16.msra.mxu1 %v2024_v40  ;;  %v2070_v9 = vld [vmem:[#allocation3 + $0xb4] ss:$8 sps:$4 sm:$0xff]   ;;  %v1975_v10 = vld [vmem:[#allocation3 + $0x264] ss:$8 sps:$4 sm:$0xff]   ;;  %v2072_v13 = vld [vmem:[#allocation3 + $0xb0] ss:$8 sps:$4 sm:$0xff]  }
  0x3f   :  { %857 = vmatprep.subr.bf16.mxu1 %v2028_v41  ;;  %v57_v11 = vld [vmem:[%s2332_s1] sm:$0xff]  ;;  %v1978_v17 = vld [vmem:[#allocation3 + $0x274] ss:$8 sps:$4 sm:$0xff]   ;;  %v1982_v27 = vld [vmem:[#allocation3 + $0x290] ss:$8 sps:$4 sm:$0xff]  }
  0x40   :  { %v65_v12 = vcombine.high %v57_v11, %v57_v11  ;;  %v1973_v14 = vld [vmem:[#allocation3 + $0x260] ss:$8 sps:$4 sm:$0xff]   ;;  %v1987_v29 = vld [vmem:[#allocation3 + $0x2a4] ss:$8 sps:$4 sm:$0xff]   ;;  %v2096_v32 = vld [vmem:[#allocation3 + $0xf0] ss:$8 sps:$4 sm:$0xff]   ;;  %v73_v38 = vpack.c.bf16 %v57_v11, %v57_v11 }
  0x41   :  { %903 = vmatpush1.bf16.msra.mxu0 %v1926_v15  ;;  %v2076_v15 = vld [vmem:[#allocation3 + $0xc4] ss:$8 sps:$4 sm:$0xff]   ;;  %v1990_v35 = vld [vmem:[#allocation3 + $0x2b4] ss:$8 sps:$4 sm:$0xff]   ;;  %v1988_v40 = vld [vmem:[#allocation3 + $0x2b0] ss:$8 sps:$4 sm:$0xff]  }
  0x42   :  { %904 = vmatprep.subr.bf16.mxu0 %v1927_v16  ;;  %858 = vmatpush1.bf16.msra.mxu1 %v2030_v45  ;;  %v74_v16 = vpack.c.bf16 %v65_v12, %v65_v12  ;;  %v1029_v31 = vld [vmem:[#allocation6 + $0x20] sm:$0xff] }
  0x43   :  { %859 = vmatprep.subr.bf16.mxu1 %v2034_v47  ;;  %v1045_v45 = vld [vmem:[#allocation6 + $0xa0] sm:$0xff] }
  0x44   :  { %881 = vmatprep.mubr.bf16.mxu1 %v74_v16  ;;  %v1991_v47 = vld [vmem:[#allocation3 + $0x2c0] ss:$8 sps:$4 sm:$0xff]   ;;  %v2057_v11 = vld [vmem:[#allocation3 + $0x384] ss:$8 sps:$4 sm:$0xff]  }
  0x45   :  { %905 = vmatpush1.bf16.msra.mxu0 %v1929_v18  ;;  %v2078_v18 = vld [vmem:[#allocation3 + $0xc0] ss:$8 sps:$4 sm:$0xff]  }
  0x46   :  { %906 = vmatprep.subr.bf16.mxu0 %v1930_v19  ;;  %860 = vmatpush1.bf16.msra.mxu1 %v2036_v50  ;;  %v1976_v19 = vld [vmem:[#allocation3 + $0x270] ss:$8 sps:$4 sm:$0xff]   ;;  %v2055_v12 = vld [vmem:[#allocation3 + $0x380] ss:$8 sps:$4 sm:$0xff]  }
  0x47   :  { %861 = vmatprep.subr.bf16.mxu1 %v2040_v54  ;;  %v2002_v54 = vld [vmem:[#allocation3 + $0x2f4] ss:$8 sps:$4 sm:$0xff]   ;;  %v2067_v16 = vld [vmem:[#allocation3 + $0x3a0] ss:$8 sps:$4 sm:$0xff]  }
  0x49   :  { %907 = vmatpush1.bf16.msra.mxu0 %v1932_v20  ;;  %v2082_v20 = vld [vmem:[#allocation3 + $0xd4] ss:$8 sps:$4 sm:$0xff]  }
  0x4a   :  { %908 = vmatprep.subr.bf16.mxu0 %v1933_v21  ;;  %862 = vmatpush1.bf16.msra.mxu1 %v2042_v56  ;;  %v1981_v21 = vld [vmem:[#allocation3 + $0x284] ss:$8 sps:$4 sm:$0xff]   ;;  %v2000_v56 = vld [vmem:[#allocation3 + $0x2f0] ss:$8 sps:$4 sm:$0xff]  }
  0x4b   :  { %863 = vmatprep.subr.bf16.mxu1 %v2046_v57 }
  0x4d   :  { %909 = vmatpush1.bf16.msra.mxu0 %v1935_v22  ;;  %v2084_v22 = vld [vmem:[#allocation3 + $0xd0] ss:$8 sps:$4 sm:$0xff]  }
  0x4e   :  { %910 = vmatprep.subr.bf16.mxu0 %v1936_v23  ;;  %864 = vmatpush1.bf16.msra.mxu1 %v2048_v60  ;;  %v1979_v23 = vld [vmem:[#allocation3 + $0x280] ss:$8 sps:$4 sm:$0xff]  }
  0x4f   :  { %865 = vmatprep.subr.bf16.mxu1 %v2052_v61  ;;  %v2007_v60 = vld [vmem:[#allocation3 + $0x300] ss:$8 sps:$4 sm:$0xff]  }
  0x51   :  { %911 = vmatpush1.bf16.msra.mxu0 %v1938_v24  ;;  %v2088_v24 = vld [vmem:[#allocation3 + $0xe4] ss:$8 sps:$4 sm:$0xff]  }
  0x52   :  { %912 = vmatprep.subr.bf16.mxu0 %v1939_v25  ;;  %866 = vmatpush1.bf16.msra.mxu1 %v2054_v0  ;;  %v1984_v25 = vld [vmem:[#allocation3 + $0x294] ss:$8 sps:$4 sm:$0xff]   ;;  %v2021_v0 = vld [vmem:[#allocation3 + $0x324] ss:$8 sps:$4 sm:$0xff]  }
  0x53   :  { %867 = vmatprep.subr.bf16.mxu1 %v2058_v1  ;;  %v2019_v1 = vld [vmem:[#allocation3 + $0x320] ss:$8 sps:$4 sm:$0xff]  }
  0x55   :  { %913 = vmatpush1.bf16.msra.mxu0 %v1941_v26  ;;  %v2090_v26 = vld [vmem:[#allocation3 + $0xe0] ss:$8 sps:$4 sm:$0xff]  }
  0x56   :  { %914 = vmatprep.subr.bf16.mxu0 %v1942_v28  ;;  %868 = vmatpush1.bf16.msra.mxu1 %v2060_v4  ;;  %v2094_v28 = vld [vmem:[#allocation3 + $0xf4] ss:$8 sps:$4 sm:$0xff]   ;;  %v2033_v4 = vld [vmem:[#allocation3 + $0x344] ss:$8 sps:$4 sm:$0xff]  }
  0x57   :  { %869 = vmatprep.subr.bf16.mxu1 %v2064_v5  ;;  %v2039_v5 = vld [vmem:[#allocation3 + $0x354] ss:$8 sps:$4 sm:$0xff]  }
  0x59   :  { %915 = vmatpush1.bf16.msra.mxu0 %v1944_v30  ;;  %v1025_v30 = vld [vmem:[#allocation6] sm:$0xff] }
  0x5a   :  { %916 = vmatprep.subr.bf16.mxu0 %v1945_v33  ;;  %870 = vmatpush1.bf16.msra.mxu1 %v2066_v8  ;;  %v1985_v33 = vld [vmem:[#allocation3 + $0x2a0] ss:$8 sps:$4 sm:$0xff]   ;;  %v1824_v34 = vcombine.high %v1025_v30, %v1029_v31 }
  0x5b   :  { %871 = vmatprep.subr.bf16.mxu1 %v2070_v9  ;;  %v2043_v8 = vld [vmem:[#allocation3 + $0x360] ss:$8 sps:$4 sm:$0xff]   ;;  %v2051_v9 = vld [vmem:[#allocation3 + $0x374] ss:$8 sps:$4 sm:$0xff]  }
  0x5d   :  { %917 = vmatpush1.bf16.msra.mxu0 %v1947_v36  ;;  %v1033_v36 = vld [vmem:[#allocation6 + $0x40] sm:$0xff] }
  0x5e   :  { %918 = vmatprep.subr.bf16.mxu0 %v1948_v37  ;;  %872 = vmatpush1.bf16.msra.mxu1 %v2072_v13  ;;  %v1037_v37 = vld [vmem:[#allocation6 + $0x60] sm:$0xff]  ;;  %v2063_v13 = vld [vmem:[#allocation3 + $0x394] ss:$8 sps:$4 sm:$0xff]  }
  0x5f   :  { %873 = vmatprep.subr.bf16.mxu1 %v2076_v15  ;;  %v1832_v41 = vcombine.high %v1033_v36, %v1037_v37  ;;  %v1831_v46 = vcombine.low %v1033_v36, %v1037_v37  ;;  %v2069_v15 = vld [vmem:[#allocation3 + $0x3a4] ss:$8 sps:$4 sm:$0xff]  }
  0x60   :  { %v1065_v36 = vld [vmem:[#allocation6 + $0x140] sm:$0xff] }
  0x61   :  { %919 = vmatpush1.bf16.msra.mxu0 %v1950_v39  ;;  %v1823_v39 = vcombine.low %v1025_v30, %v1029_v31  ;;  %v1069_v37 = vld [vmem:[#allocation6 + $0x160] sm:$0xff] }
  0x62   :  { %920 = vmatprep.subr.bf16.mxu0 %v1951_v42  ;;  %874 = vmatpush1.bf16.msra.mxu1 %v2078_v18  ;;  %v1993_v42 = vld [vmem:[#allocation3 + $0x2c4] ss:$8 sps:$4 sm:$0xff]   ;;  %v2073_v18 = vld [vmem:[#allocation3 + $0x3b0] ss:$8 sps:$4 sm:$0xff]  }
  0x63   :  { %875 = vmatprep.subr.bf16.mxu1 %v2082_v20  ;;  %v2079_v20 = vld [vmem:[#allocation3 + $0x3c0] ss:$8 sps:$4 sm:$0xff]  }
  0x65   :  { %921 = vmatpush1.bf16.msra.mxu0 %v1953_v44  ;;  %v1041_v44 = vld [vmem:[#allocation6 + $0x80] sm:$0xff] }
  0x66   :  { %931 = vmatprep.subr.bf16.mxu0 %v1957_v48  ;;  %876 = vmatpush1.bf16.msra.mxu1 %v2084_v22  ;;  %v1840_v48 = vcombine.high %v1041_v44, %v1045_v45  ;;  %v1839_v50 = vcombine.low %v1041_v44, %v1045_v45  ;;  %v2085_v22 = vld [vmem:[#allocation3 + $0x3d0] ss:$8 sps:$4 sm:$0xff]   ;;  %v1081_v45 = vld [vmem:[#allocation6 + $0x1c0] sm:$0xff] }
  0x67   :  { %877 = vmatprep.subr.bf16.mxu1 %v2088_v24  ;;  %v2091_v24 = vld [vmem:[#allocation3 + $0x3e0] ss:$8 sps:$4 sm:$0xff]  }
  0x68   :  { %923 = vmatmul.mubr.bf16.vlgmr.msra.gmra.mrb[0].mxu0 %v75_v49  ;;  %v1996_v49 = vld [vmem:[#allocation3 + $0x2d4] ss:$8 sps:$4 sm:$0xff]  }
  0x69   :  { %932 = vmatpush1.bf16.msra.mxu0 %v1955_v51  ;;  %963 = vmatprep.mubr.bf16.mxu0 %v78_v52  ;;  %v1994_v51 = vld [vmem:[#allocation3 + $0x2d0] ss:$8 sps:$4 sm:$0xff]   ;;  %v1999_v52 = vld [vmem:[#allocation3 + $0x2e4] ss:$8 sps:$4 sm:$0xff]  }
  0x6a   :  { %933 = vmatprep.subr.bf16.mxu0 %v1960_v53  ;;  %878 = vmatpush1.bf16.msra.mxu1 %v2090_v26  ;;  %v1997_v53 = vld [vmem:[#allocation3 + $0x2e0] ss:$8 sps:$4 sm:$0xff]   ;;  %v2098_v26 = vld [vmem:[#allocation3 + $0x3f0] ss:$8 sps:$4 sm:$0xff]  }
  0x6b   :  { %879 = vmatprep.subr.bf16.mxu1 %v2094_v28  ;;  %v1049_v28 = vld [vmem:[#allocation6 + $0xc0] sm:$0xff] }
  0x6d   :  { %934 = vmatpush1.bf16.msra.mxu0 %v1958_v55  ;;  %v2271_v55 = vld [vmem:[%s2332_s1 + $0x18] sm:$0xff] }
  0x6e   :  { %935 = vmatprep.subr.bf16.mxu0 %v1963_v58  ;;  %880 = vmatpush1.bf16.msra.mxu1 %v2096_v32  ;;  %v68_v57 = vcombine.high %v2271_v55, %v2271_v55  ;;  %v2009_v58 = vld [vmem:[#allocation3 + $0x304] ss:$8 sps:$4 sm:$0xff]  }
  0x6f   :  { %1451 = vmatprep.subr.bf16.mxu1 %v1824_v34  ;;  %v1057_v32 = vld [vmem:[#allocation6 + $0x100] sm:$0xff] }
  0x70   :  { %v80_v61 = vpack.c.bf16 %v68_v57, %v68_v57 }
  0x71   :  { %936 = vmatpush1.bf16.msra.mxu0 %v1961_v59  ;;  %882 = vmatmul.mubr.bf16.vlgmr.msra.gmra.mrb[0].mxu1 %v73_v38  ;;  %v77_v59 = vpack.c.bf16 %v2259_v43, %v2259_v43  ;;  %v2031_v43 = vld [vmem:[#allocation3 + $0x340] ss:$8 sps:$4 sm:$0xff]   ;;  %v1864_v38 = vcombine.high %v1065_v36, %v1069_v37 }
  0x72   :  { %937 = vmatprep.subr.bf16.mxu0 %v1966_v62  ;;  %1452 = vmatpush1.bf16.msra.mxu1 %v1823_v39  ;;  %v2015_v62 = vld [vmem:[#allocation3 + $0x314] ss:$8 sps:$4 sm:$0xff]   ;;  %v1863_v39 = vcombine.low %v1065_v36, %v1069_v37  ;;  %v1074_v36 = vld [vmem:[#allocation6 + $0x188] sm:$0xff] }
  0x73   :  { %1453 = vmatprep.subr.bf16.mxu1 %v1832_v41  ;;  %v1077_v41 = vld [vmem:[#allocation6 + $0x1a0] sm:$0xff]  ;;  %v1078_v37 = vld [vmem:[#allocation6 + $0x1a8] sm:$0xff] }
  0x75   :  { %938 = vmatpush1.bf16.msra.mxu0 %v1964_v63  ;;  %v2013_v63 = vld [vmem:[#allocation3 + $0x310] ss:$8 sps:$4 sm:$0xff]  }
  0x76   :  { %939 = vmatprep.subr.bf16.mxu0 %v1969_v2  ;;  %1454 = vmatpush1.bf16.msra.mxu1 %v1831_v46  ;;  %v2027_v2 = vld [vmem:[#allocation3 + $0x334] ss:$8 sps:$4 sm:$0xff]   ;;  %v1085_v46 = vld [vmem:[#allocation6 + $0x1e0] sm:$0xff] }
  0x77   :  { %1455 = vmatprep.subr.bf16.mxu1 %v1840_v48  ;;  %v1879_v48 = vcombine.low %v1081_v45, %v1085_v46 }
  0x79   :  { %940 = vmatpush1.bf16.msra.mxu0 %v1967_v3  ;;  %v2025_v3 = vld [vmem:[#allocation3 + $0x330] ss:$8 sps:$4 sm:$0xff]  }
  0x7a   :  { %941 = vmatprep.subr.bf16.mxu0 %v1972_v6  ;;  %1456 = vmatpush1.bf16.msra.mxu1 %v1839_v50  ;;  %v2037_v6 = vld [vmem:[#allocation3 + $0x350] ss:$8 sps:$4 sm:$0xff]   ;;  %v1030_v50 = vld [vmem:[#allocation6 + $0x28] sm:$0xff] }
  0x7d   :  { %942 = vmatpush1.bf16.msra.mxu0 %v1970_v7  ;;  %v2045_v7 = vld [vmem:[#allocation3 + $0x364] ss:$8 sps:$4 sm:$0xff]  }
  0x7e   :  { %943 = vmatprep.subr.bf16.mxu0 %v1975_v10  ;;  %v2049_v10 = vld [vmem:[#allocation3 + $0x370] ss:$8 sps:$4 sm:$0xff]  }
  0x81   :  { %944 = vmatpush1.bf16.msra.mxu0 %v1973_v14  ;;  %v2061_v14 = vld [vmem:[#allocation3 + $0x390] ss:$8 sps:$4 sm:$0xff]  }
  0x82   :  { %945 = vmatprep.subr.bf16.mxu0 %v1978_v17  ;;  %v2075_v17 = vld [vmem:[#allocation3 + $0x3b4] ss:$8 sps:$4 sm:$0xff]  }
  0x85   :  { %946 = vmatpush1.bf16.msra.mxu0 %v1976_v19  ;;  %v2081_v19 = vld [vmem:[#allocation3 + $0x3c4] ss:$8 sps:$4 sm:$0xff]  }
  0x86   :  { %947 = vmatprep.subr.bf16.mxu0 %v1981_v21  ;;  %v2087_v21 = vld [vmem:[#allocation3 + $0x3d4] ss:$8 sps:$4 sm:$0xff]  }
  0x89   :  { %948 = vmatpush1.bf16.msra.mxu0 %v1979_v23  ;;  %v2093_v23 = vld [vmem:[#allocation3 + $0x3e4] ss:$8 sps:$4 sm:$0xff]  }
  0x8a   :  { %949 = vmatprep.subr.bf16.mxu0 %v1984_v25  ;;  %v2100_v25 = vld [vmem:[#allocation3 + $0x3f4] ss:$8 sps:$4 sm:$0xff]  }
  0x8d   :  { %950 = vmatpush1.bf16.msra.mxu0 %v1982_v27  ;;  %v79_v27 = vpack.c.bf16 %v2271_v55, %v2271_v55 }
  0x8e   :  { %951 = vmatprep.subr.bf16.mxu0 %v1987_v29  ;;  %v1053_v29 = vld [vmem:[#allocation6 + $0xe0] sm:$0xff] }
  0x8f   :  { %v1847_v30 = vcombine.low %v1049_v28, %v1053_v29  ;;  %v1848_v31 = vcombine.high %v1049_v28, %v1053_v29  ;;  %v1062_v28 = vld [vmem:[#allocation6 + $0x128] sm:$0xff] }
  0x91   :  { %952 = vmatpush1.bf16.msra.mxu0 %v1985_v33  ;;  %1457 = vmatprep.subr.bf16.mxu1 %v1848_v31  ;;  %v1061_v33 = vld [vmem:[#allocation6 + $0x120] sm:$0xff] }
  0x92   :  { %953 = vmatprep.subr.bf16.mxu0 %v1990_v35  ;;  %1458 = vmatpush1.bf16.msra.mxu1 %v1847_v30  ;;  %v1856_v34 = vcombine.high %v1057_v32, %v1061_v33  ;;  %v1855_v35 = vcombine.low %v1057_v32, %v1061_v33  ;;  %v1066_v32 = vld [vmem:[#allocation6 + $0x148] sm:$0xff] }
  0x93   :  { %v1070_v33 = vld [vmem:[#allocation6 + $0x168] sm:$0xff] }
  0x94   :  { %1459 = vmatprep.subr.bf16.mxu1 %v1856_v34 }
  0x95   :  { %954 = vmatpush1.bf16.msra.mxu0 %v1988_v40  ;;  %v1073_v40 = vld [vmem:[#allocation6 + $0x180] sm:$0xff] }
  0x96   :  { %955 = vmatprep.subr.bf16.mxu0 %v1993_v42  ;;  %1460 = vmatpush1.bf16.msra.mxu1 %v1855_v35  ;;  %v1872_v42 = vcombine.high %v1073_v40, %v1077_v41  ;;  %v1871_v44 = vcombine.low %v1073_v40, %v1077_v41  ;;  %v1866_v35 = vcombine.high %v1066_v32, %v1070_v33  ;;  %v1082_v40 = vld [vmem:[#allocation6 + $0x1c8] sm:$0xff] }
  0x97   :  { %1461 = vmatprep.subr.bf16.mxu1 %v1864_v38  ;;  %v1865_v38 = vcombine.low %v1066_v32, %v1070_v33  ;;  %v1086_v41 = vld [vmem:[#allocation6 + $0x1e8] sm:$0xff]  ;;  %v1060_v32 = vld [vmem:[#allocation6 + $0x118] sm:$0xff] }
  0x98   :  { %v1064_v33 = vld [vmem:[#allocation6 + $0x138] sm:$0xff] }
  0x99   :  { %956 = vmatpush1.bf16.msra.mxu0 %v1991_v47  ;;  %v1880_v47 = vcombine.high %v1081_v45, %v1085_v46  ;;  %v1027_v45 = vld [vmem:[#allocation6 + $0x10] sm:$0xff] }
  0x9a   :  { %957 = vmatprep.subr.bf16.mxu0 %v1996_v49  ;;  %1462 = vmatpush1.bf16.msra.mxu1 %v1863_v39  ;;  %v1026_v49 = vld [vmem:[#allocation6 + $0x8] sm:$0xff]  ;;  %v1874_v39 = vcombine.high %v1074_v36, %v1078_v37  ;;  %v1031_v46 = vld [vmem:[#allocation6 + $0x30] sm:$0xff] }
  0x9b   :  { %1463 = vmatprep.subr.bf16.mxu1 %v1872_v42  ;;  %v1873_v42 = vcombine.low %v1074_v36, %v1078_v37  ;;  %v1068_v36 = vld [vmem:[#allocation6 + $0x158] sm:$0xff] }
  0x9c   :  { %v1072_v37 = vld [vmem:[#allocation6 + $0x178] sm:$0xff] }
  0x9d   :  { %958 = vmatpush1.bf16.msra.mxu0 %v1994_v51  ;;  %v1826_v51 = vcombine.high %v1026_v49, %v1030_v50 }
  0x9e   :  { %959 = vmatprep.subr.bf16.mxu0 %v1999_v52  ;;  %1464 = vmatpush1.bf16.msra.mxu1 %v1871_v44  ;;  %v1825_v52 = vcombine.low %v1026_v49, %v1030_v50  ;;  %v1882_v44 = vcombine.high %v1082_v40, %v1086_v41  ;;  %v1035_v49 = vld [vmem:[#allocation6 + $0x50] sm:$0xff] }
  0x9f   :  { %1465 = vmatprep.subr.bf16.mxu1 %v1880_v47  ;;  %v1881_v47 = vcombine.low %v1082_v40, %v1086_v41  ;;  %v1039_v50 = vld [vmem:[#allocation6 + $0x70] sm:$0xff]  ;;  %v1080_v40 = vld [vmem:[#allocation6 + $0x1b8] sm:$0xff]  ;;  %v1869_v41 = vcombine.low %v1068_v36, %v1072_v37 }
  0xa1   :  { %960 = vmatpush1.bf16.msra.mxu0 %v1997_v53  ;;  %v2182_v53 = vmov 0  }
  0xa2   :  { %961 = vmatprep.subr.bf16.mxu0 %v2002_v54  ;;  %1466 = vmatpush1.bf16.msra.mxu1 %v1879_v48  ;;  %v1828_v48 = vcombine.high %v1027_v45, %v1031_v46 }
  0xa3   :  { %1483 = vmatprep.mubr.bf16.mxu1 %v2182_v53  ;;  %1492 = vmatprep.subr.bf16.mxu1 %v1826_v51  ;;  %v1827_v51 = vcombine.low %v1027_v45, %v1031_v46  ;;  %v1088_v45 = vld [vmem:[#allocation6 + $0x1f8] sm:$0xff] }
  0xa5   :  { %962 = vmatpush1.bf16.msra.mxu0 %v2000_v56 }
  0xa6   :  { %972 = vmatprep.subr.bf16.mxu0 %v2009_v58  ;;  %v1018_v58 = vlaneseq }
  0xa8   :  { %964 = vmatmul.mubr.bf16.vlgmr.msra.gmra.mrb[0].mxu0 %v77_v59  ;;  %v1014_v59 = vld [vmem:[%s2334_s3 + $0x1] sm:$0x1] }
  0xa9   :  { %973 = vmatpush1.bf16.msra.mxu0 %v2007_v60  ;;  %1004 = vmatprep.mubr.bf16.mxu0 %v80_v61  ;;  %v1015_v60 = vstv %s2331_s0 }
  0xaa   :  { %974 = vmatprep.subr.bf16.mxu0 %v2015_v62  ;;  %v1016_v61 = vmul.f32 %v1015_v60, %v1014_v59  ;;  %v2286_v62 = vshrl.u32 %v1018_v58, 7  ;;  %v1051_v58 = vld [vmem:[#allocation6 + $0xd0] sm:$0xff] }
  0xab   :  { %v1055_v59 = vld [vmem:[#allocation6 + $0xf0] sm:$0xff] }
  0xad   :  { %975 = vmatpush1.bf16.msra.mxu0 %v2013_v63  ;;  %v1013_v63 = vld [vmem:[%s2334_s3] sm:$0x1] }
  0xae   :  { %976 = vmatprep.subr.bf16.mxu0 %v2021_v0  ;;  %v1017_v0 = vadd.f32 %v1016_v61, %v1013_v63  ;;  %v1852_v61 = vcombine.high %v1051_v58, %v1055_v59  ;;  %v1059_v63 = vld [vmem:[#allocation6 + $0x110] sm:$0xff] }
  0xb1   :  { %977 = vmatpush1.bf16.msra.mxu0 %v2019_v1  ;;  %v1020_v1 = vsub.s32 0, %v2286_v62 }
  0xb2   :  { %978 = vmatprep.subr.bf16.mxu0 %v2027_v2 }
  0xb3   :  { %v1021_v2 = vrot.slane %v1017_v0, %v1020_v1  ;;  %v1063_v0 = vld [vmem:[#allocation6 + $0x130] sm:$0xff] }
  0xb5   :  { %979 = vmatpush1.bf16.msra.mxu0 %v2025_v3 }
  0xb6   :  { %980 = vmatprep.subr.bf16.mxu0 %v2033_v4 }
  0xb9   :  { %981 = vmatpush1.bf16.msra.mxu0 %v2031_v43 }
  0xba   :  { %982 = vmatprep.subr.bf16.mxu0 %v2039_v5 }
  0xbd   :  { %983 = vmatpush1.bf16.msra.mxu0 %v2037_v6 }
  0xbe   :  { %984 = vmatprep.subr.bf16.mxu0 %v2045_v7 }
  0xc1   :  { %985 = vmatpush1.bf16.msra.mxu0 %v2043_v8 }
  0xc2   :  { %986 = vmatprep.subr.bf16.mxu0 %v2051_v9  ;;  %v1034_v9 = vld [vmem:[#allocation6 + $0x48] sm:$0xff] }
  0xc5   :  { %987 = vmatpush1.bf16.msra.mxu0 %v2049_v10  ;;  %v1038_v10 = vld [vmem:[#allocation6 + $0x68] sm:$0xff] }
  0xc6   :  { %988 = vmatprep.subr.bf16.mxu0 %v2057_v11 }
  0xc9   :  { %989 = vmatpush1.bf16.msra.mxu0 %v2055_v12 }
  0xca   :  { %990 = vmatprep.subr.bf16.mxu0 %v2063_v13 }
  0xcd   :  { %991 = vmatpush1.bf16.msra.mxu0 %v2061_v14  ;;  %v1834_v14 = vcombine.high %v1034_v9, %v1038_v10 }
  0xce   :  { %992 = vmatprep.subr.bf16.mxu0 %v2069_v15  ;;  %v1042_v15 = vld [vmem:[#allocation6 + $0x88] sm:$0xff] }
  0xd1   :  { %993 = vmatpush1.bf16.msra.mxu0 %v2067_v16  ;;  %v1046_v16 = vld [vmem:[#allocation6 + $0xa8] sm:$0xff] }
  0xd2   :  { %994 = vmatprep.subr.bf16.mxu0 %v2075_v17 }
  0xd5   :  { %995 = vmatpush1.bf16.msra.mxu0 %v2073_v18  ;;  %v1833_v18 = vcombine.low %v1034_v9, %v1038_v10 }
  0xd6   :  { %996 = vmatprep.subr.bf16.mxu0 %v2081_v19 }
  0xd9   :  { %997 = vmatpush1.bf16.msra.mxu0 %v2079_v20  ;;  %v1842_v20 = vcombine.high %v1042_v15, %v1046_v16 }
  0xda   :  { %998 = vmatprep.subr.bf16.mxu0 %v2087_v21  ;;  %v1050_v21 = vld [vmem:[#allocation6 + $0xc8] sm:$0xff] }
  0xdd   :  { %999 = vmatpush1.bf16.msra.mxu0 %v2085_v22  ;;  %v1054_v22 = vld [vmem:[#allocation6 + $0xe8] sm:$0xff] }
  0xde   :  { %1000 = vmatprep.subr.bf16.mxu0 %v2093_v23  ;;  %v1849_v30 = vcombine.low %v1050_v21, %v1054_v22 }
  0xe1   :  { %1001 = vmatpush1.bf16.msra.mxu0 %v2091_v24  ;;  %v1841_v24 = vcombine.low %v1042_v15, %v1046_v16  ;;  %v1028_v16 = vld [vmem:[#allocation6 + $0x18] sm:$0xff] }
  0xe2   :  { %1002 = vmatprep.subr.bf16.mxu0 %v2100_v25 }
  0xe5   :  { %1003 = vmatpush1.bf16.msra.mxu0 %v2098_v26  ;;  %v1850_v26 = vcombine.high %v1050_v21, %v1054_v22  ;;  %v1040_v21 = vld [vmem:[#allocation6 + $0x78] sm:$0xff] }
  0xe8   :  { %1005 = vmatmul.mubr.bf16.vlgmr.msra.gmra.mrb[0].mxu0 %v79_v27  ;;  %v1058_v27 = vld [vmem:[#allocation6 + $0x108] sm:$0xff] }
  0xe9   :  { %v1858_v31 = vcombine.high %v1058_v27, %v1062_v28  ;;  %v1857_v34 = vcombine.low %v1058_v27, %v1062_v28  ;;  %v1052_v28 = vld [vmem:[#allocation6 + $0xd8] sm:$0xff] }
 0x144   :  { %v883_v54 = vpop.f32.mrb[0].mxu1 }
 0x145   :  { %v885_v55 = vpop.f32.mrb[1].mxu1 }
 0x146   :  { %v887_v56 = vpop.f32.mrb[2].mxu1 }
 0x147   :  { %v888_v57 = vpop.f32.mrb[3].mxu1  ;;  %v1835_v56 = vcombine.low %v1035_v49, %v1039_v50 }
 0x1bb   :  { %v1006_v3 = vpop.f32.mrb[0].mxu0 }
 0x1bc   :  { %v1887_v4 = vadd.f32 %v1006_v3, %v883_v54  ;;  %v1008_v43 = vpop.f32.mrb[1].mxu0  ;;  %v1043_v54 = vld [vmem:[#allocation6 + $0x90] sm:$0xff]  ;;  %v1860_v3 = vcombine.high %v1059_v63, %v1063_v0 }
 0x1bd   :  { %v1888_v5 = vadd.f32 %v1008_v43, %v885_v55  ;;  %v1010_v6 = vpop.f32.mrb[2].mxu0  ;;  %v1047_v55 = vld [vmem:[#allocation6 + $0xb0] sm:$0xff] }
 0x1be   :  { %v1022_v7 = vadd.f32 %v1887_v4, %v1021_v2  ;;  %v1011_v8 = vpop.f32.mrb[3].mxu0  ;;  %v1844_v57 = vcombine.high %v1043_v54, %v1047_v55  ;;  %v1843_v60 = vcombine.low %v1043_v54, %v1047_v55  ;;  %v1851_v2 = vcombine.low %v1051_v58, %v1055_v59  ;;  %v1071_v43 = vld [vmem:[#allocation6 + $0x170] sm:$0xff] }
 0x1bf   :  { %v1079_v8 = vld [vmem:[#allocation6 + $0x1b0] sm:$0xff] }
 0x1c0   :  { %2102 = vtanh.f32 %v1022_v7  ;;  %v1075_v7 = vld [vmem:[#allocation6 + $0x190] sm:$0xff] }
 0x1c1   :  { %v1876_v10 = vcombine.high %v1075_v7, %v1079_v8 }
 0x1ca   :  { %v2103_v11 = vpop.eup %2102 }
 0x1cb   :  { %v1661_v12 = vmul.f32 %v2103_v11, %v2103_v11  ;;  %v2294_v13 = vpack.c.bf16 %v2103_v11, %v2103_v11  ;;  %v1083_v11 = vld [vmem:[#allocation6 + $0x1d0] sm:$0xff] }
 0x1cd   :  { %v1662_v17 = vsub.f32 1.0, %v1661_v12  ;;  %1484 = vmatmul.mubr.bf16.vlgmr.msra.gmra.mrb[4].mxu1 %v2294_v13  ;;  %v1087_v12 = vld [vmem:[#allocation6 + $0x1f0] sm:$0xff] }
 0x1ce   :  { %1493 = vmatpush1.bf16.msra.mxu1 %v1825_v52  ;;  %1524 = vmatprep.mubr.bf16.mxu1 %v2182_v53  ;;  %v1836_v52 = vcombine.high %v1035_v49, %v1039_v50  ;;  %v1884_v15 = vcombine.high %v1083_v11, %v1087_v12 }
 0x1cf   :  { %v1664_v19 = vrot.slane %v1662_v17, 6  ;;  %1494 = vmatprep.subr.bf16.mxu1 %v1834_v14  ;;  %v1875_v14 = vcombine.low %v1075_v7, %v1079_v8  ;;  %v1032_v17 = vld [vmem:[#allocation6 + $0x38] sm:$0xff] }
 0x1d0   :  { %v1829_v22 = vcombine.low %v1028_v16, %v1032_v17 }
 0x1d1   :  { %v1666_v23 = vmul.f32 %v1888_v5, %v1664_v19  ;;  %v1859_v5 = vcombine.low %v1059_v63, %v1063_v0  ;;  %v1830_v19 = vcombine.high %v1028_v16, %v1032_v17  ;;  %v1101_v63 = vsub.s32 2, %v2286_v62 }
 0x1d2   :  { %1495 = vmatpush1.bf16.msra.mxu1 %v1833_v18  ;;  %v1883_v18 = vcombine.low %v1083_v11, %v1087_v12  ;;  %v2183_v0 = vmov 1983009808   ;;  %v1109_v17 = vsub.s32 4, %v2286_v62 }
 0x1d3   :  { %1496 = vmatprep.subr.bf16.mxu1 %v1842_v20  ;;  %v1667_v25 = vmul.f32 %v1887_v4, %v1666_v23  ;;  %v1067_v4 = vld [vmem:[#allocation6 + $0x150] sm:$0xff]  ;;  %v1036_v20 = vld [vmem:[#allocation6 + $0x58] sm:$0xff] }
 0x1d4   :  { %v1868_v6 = vcombine.high %v1067_v4, %v1071_v43  ;;  %v1867_v9 = vcombine.low %v1067_v4, %v1071_v43  ;;  %v1838_v23 = vcombine.high %v1036_v20, %v1040_v21 }
 0x1d5   :  { %v1669_v29 = vsel %vm1668_vm0, %v1667_v25, 0.0  ;;  %v1048_v25 = vld [vmem:[#allocation6 + $0xb8] sm:$0xff] }
 0x1d6   :  { %1497 = vmatpush1.bf16.msra.mxu1 %v1841_v24  ;;  %1670 = vadd.xlane.f32.xlu0 %v1669_v29  ;;  %v1044_v24 = vld [vmem:[#allocation6 + $0x98] sm:$0xff] }
 0x1d7   :  { %1498 = vmatprep.subr.bf16.mxu1 %v1850_v26  ;;  %v1837_v26 = vcombine.low %v1036_v20, %v1040_v21  ;;  %v1846_v27 = vcombine.high %v1044_v24, %v1048_v25  ;;  %v1056_v29 = vld [vmem:[#allocation6 + $0xf8] sm:$0xff] }
 0x1da   :  { %1499 = vmatpush1.bf16.msra.mxu1 %v1849_v30  ;;  %v1845_v30 = vcombine.low %v1044_v24, %v1048_v25 }
 0x1db   :  { %1500 = vmatprep.subr.bf16.mxu1 %v1858_v31  ;;  %v1854_v31 = vcombine.high %v1052_v28, %v1056_v29 }
 0x1de   :  { %1501 = vmatpush1.bf16.msra.mxu1 %v1857_v34  ;;  %v1853_v34 = vcombine.low %v1052_v28, %v1056_v29  ;;  %v1117_v29 = vsub.s32 6, %v2286_v62 }
 0x1df   :  { %1502 = vmatprep.subr.bf16.mxu1 %v1866_v35  ;;  %v1862_v35 = vcombine.high %v1060_v32, %v1064_v33 }
 0x1e2   :  { %1503 = vmatpush1.bf16.msra.mxu1 %v1865_v38  ;;  %v1861_v38 = vcombine.low %v1060_v32, %v1064_v33 }
 0x1e3   :  { %1504 = vmatprep.subr.bf16.mxu1 %v1874_v39  ;;  %v1076_v39 = vld [vmem:[#allocation6 + $0x198] sm:$0xff] }
 0x1e4   :  { %v1877_v46 = vcombine.low %v1076_v39, %v1080_v40 }
 0x1e6   :  { %1505 = vmatpush1.bf16.msra.mxu1 %v1873_v42  ;;  %v1878_v42 = vcombine.high %v1076_v39, %v1080_v40 }
 0x1e7   :  { %1506 = vmatprep.subr.bf16.mxu1 %v1882_v44  ;;  %v1084_v44 = vld [vmem:[#allocation6 + $0x1d8] sm:$0xff] }
 0x1ea   :  { %1507 = vmatpush1.bf16.msra.mxu1 %v1881_v47  ;;  %v1886_v47 = vcombine.high %v1084_v44, %v1088_v45 }
 0x1eb   :  { %1533 = vmatprep.subr.bf16.mxu1 %v1828_v48  ;;  %v1885_v48 = vcombine.low %v1084_v44, %v1088_v45 }
 0x1ed   :  { %1525 = vmatmul.mubr.bf16.vlgmr.msra.gmra.mrb[8].mxu1 %v2294_v13 }
 0x1ee   :  { %1534 = vmatpush1.bf16.msra.mxu1 %v1827_v51  ;;  %1565 = vmatprep.mubr.bf16.mxu1 %v2182_v53  ;;  %v1089_v51 = vld [vmem:[%s2336_s5] sm:$0xff]  ;;  %s2184_s5 = smov [#allocation8]  }
 0x1ef   :  { %1535 = vmatprep.subr.bf16.mxu1 %v1836_v52  ;;  %v1097_v52 = vsub.s32 1, %v2286_v62  ;;  %v1094_v54 = vrot.slane %v1089_v51, %v1020_v1  ;;  %v1102_v4 = vrot.slane %v1089_v51, %v1101_v63 }
 0x1f1   :  { %v1098_v55 = vrot.slane %v1089_v51, %v1097_v52 }
 0x1f2   :  { %1536 = vmatpush1.bf16.msra.mxu1 %v1835_v56 }
 0x1f3   :  { %1537 = vmatprep.subr.bf16.mxu1 %v1844_v57 }
 0x1f6   :  { %1538 = vmatpush1.bf16.msra.mxu1 %v1843_v60 }
 0x1f7   :  { %1539 = vmatprep.subr.bf16.mxu1 %v1852_v61 }
 0x1fa   :  { %1540 = vmatpush1.bf16.msra.mxu1 %v1851_v2  ;;  %v1626_v2 = vunpack.c.l.s4 %v2183_v0 }
 0x1fb   :  { %1541 = vmatprep.subr.bf16.mxu1 %v1860_v3  ;;  %v1105_v3 = vsub.s32 3, %v2286_v62 }
 0x1fc   :  { %v1627_v43 = vunpack.c.0.s8 %v1626_v2 }
 0x1fe   :  { %1542 = vmatpush1.bf16.msra.mxu1 %v1859_v5  ;;  %v1106_v5 = vrot.slane %v1089_v51, %v1105_v3  ;;  %v1630_v8 = vsub.s32 %v1627_v43, %v2286_v62 }
 0x1ff   :  { %1543 = vmatprep.subr.bf16.mxu1 %v1868_v6 }
 0x202   :  { %1544 = vmatpush1.bf16.msra.mxu1 %v1867_v9 }
 0x203   :  { %1545 = vmatprep.subr.bf16.mxu1 %v1876_v10 }
 0x206   :  { %1546 = vmatpush1.bf16.msra.mxu1 %v1875_v14 }
 0x207   :  { %1547 = vmatprep.subr.bf16.mxu1 %v1884_v15 }
 0x20a   :  { %1548 = vmatpush1.bf16.msra.mxu1 %v1883_v18  ;;  %v1113_v18 = vsub.s32 5, %v2286_v62 }
 0x20b   :  { %1574 = vmatprep.subr.bf16.mxu1 %v1830_v19  ;;  %v1110_v19 = vrot.slane %v1089_v51, %v1109_v17 }
 0x20c   :  { %v1114_v20 = vrot.slane %v1089_v51, %v1113_v18 }
 0x20d   :  { %1566 = vmatmul.mubr.bf16.vlgmr.msra.gmra.mrb[12].mxu1 %v2294_v13 }
 0x20e   :  { %1575 = vmatpush1.bf16.msra.mxu1 %v1829_v22  ;;  %1606 = vmatprep.mubr.bf16.mxu1 %v2182_v53  ;;  %v1870_v53 = vcombine.high %v1068_v36, %v1072_v37 }
 0x20f   :  { %1576 = vmatprep.subr.bf16.mxu1 %v1838_v23 }
 0x212   :  { %1577 = vmatpush1.bf16.msra.mxu1 %v1837_v26 }
 0x213   :  { %1578 = vmatprep.subr.bf16.mxu1 %v1846_v27 }
 0x216   :  { %1579 = vmatpush1.bf16.msra.mxu1 %v1845_v30  ;;  %v1121_v30 = vsub.s32 7, %v2286_v62 }
 0x217   :  { %1580 = vmatprep.subr.bf16.mxu1 %v1854_v31  ;;  %v1118_v31 = vrot.slane %v1089_v51, %v1117_v29 }
 0x218   :  { %v1122_v32 = vrot.slane %v1089_v51, %v1121_v30 }
 0x21a   :  { %1581 = vmatpush1.bf16.msra.mxu1 %v1853_v34 }
 0x21b   :  { %1582 = vmatprep.subr.bf16.mxu1 %v1862_v35 }
 0x21e   :  { %1583 = vmatpush1.bf16.msra.mxu1 %v1861_v38 }
 0x21f   :  { %1584 = vmatprep.subr.bf16.mxu1 %v1870_v53 }
 0x222   :  { %1585 = vmatpush1.bf16.msra.mxu1 %v1869_v41 }
 0x223   :  { %1586 = vmatprep.subr.bf16.mxu1 %v1878_v42 }
 0x226   :  { %1587 = vmatpush1.bf16.msra.mxu1 %v1877_v46 }
 0x227   :  { %1588 = vmatprep.subr.bf16.mxu1 %v1886_v47 }
 0x22a   :  { %1589 = vmatpush1.bf16.msra.mxu1 %v1885_v48 }
 0x22d   :  { %1607 = vmatmul.mubr.bf16.vlgmr.msra.gmra.mrb[16].mxu1 %v2294_v13 }
 0x263   :  { %v1671_v49 = vpop.xlane.xlu0 %1670 }
 0x264   :  { %v1672_v50 = vsub.f32 0.0, %v1671_v49 }
 0x266   :  { %1674 = vst.msk [vmem:[%s2338_s7 - $0x2] sm:$0xc] %vm1673_vm1, %v1672_v50  ;;  %s1681_s7 = sshll.u32 %s2184_s5, 4  ;;  %s1682_s7 = int_to_ptr.vmem [resolvable:$true] %s1681_s7 }
 0x267   :  { %s2148_s19 = scalar_lea.vmem %s1682_s7, 256  ;;  %p2153_p3 = scmp.lt.s32.totalorder %s1682_s7, %s1682_s7 }
 0x268   :  { %p2149_p2 = scmp.ne.s32.totalorder %s1682_s7, %s2148_s19  ;;  %p2154_p4 = scmp.lt.s32.totalorder %s2148_s19, %s2148_s19 }
 0x26a   :  { %p2155_p5 = por %p2154_p4, %p2153_p3 }
 0x26c   :  { %p2156_p6 = pnand %p2155_p5, %p2149_p2 }
 0x2a0   :  { %v1485_v56 = vpop.f32.mrb[4].mxu1 }
 0x2a1   :  { %v1486_v57 = vadd.f32 %v1485_v56, %v1094_v54  ;;  %v1487_v13 = vpop.f32.mrb[5].mxu1 }
 0x2a2   :  { %v1488_v58 = vadd.f32 %v1487_v13, %v1098_v55  ;;  %v1489_v59 = vpop.f32.mrb[6].mxu1 }
 0x2a3   :  { %v1490_v60 = vpop.f32.mrb[7].mxu1 }
 0x2a4   :  { %v1623_v61 = vcombine.low %v1486_v57, %v1488_v58 }
 0x2a6   :  { %v1631_v14 = vrot.slane %v1623_v61, %v1630_v8 }
 0x2c0   :  { %v1526_v6 = vpop.f32.mrb[8].mxu1 }
 0x2c1   :  { %v1527_v7 = vadd.f32 %v1526_v6, %v1102_v4  ;;  %v1528_v1 = vpop.f32.mrb[9].mxu1 }
 0x2c2   :  { %v1529_v9 = vadd.f32 %v1528_v1, %v1106_v5  ;;  %v1530_v10 = vpop.f32.mrb[10].mxu1 }
 0x2c3   :  { %v1531_v11 = vpop.f32.mrb[11].mxu1 }
 0x2c4   :  { %v1624_v12 = vcombine.low %v1527_v7, %v1529_v9 }
 0x2c6   :  { %v1638_v15 = vrot.slane %v1624_v12, %v1630_v8 }
 0x2c8   :  { %v1639_v16 = vcombine.low %v1631_v14, %v1638_v15 }
 0x2ca   :  { %1659 = vst [vmem:[#allocation8] sm:$0xff] %v1639_v16 }
 0x2e0   :  { %v1567_v21 = vpop.f32.mrb[12].mxu1 }
 0x2e1   :  { %v1568_v22 = vadd.f32 %v1567_v21, %v1110_v19  ;;  %v1569_v23 = vpop.f32.mrb[13].mxu1 }
 0x2e2   :  { %v1570_v24 = vadd.f32 %v1569_v23, %v1114_v20  ;;  %v1571_v25 = vpop.f32.mrb[14].mxu1 }
 0x2e3   :  { %v1572_v26 = vpop.f32.mrb[15].mxu1 }
 0x2e4   :  { %v1640_v27 = vcombine.low %v1568_v22, %v1570_v24 }
 0x2e6   :  { %v1648_v28 = vrot.slane %v1640_v27, %v1630_v8 }
 0x300   :  { %v1608_v33 = vpop.f32.mrb[16].mxu1 }
 0x301   :  { %v1609_v34 = vadd.f32 %v1608_v33, %v1118_v31  ;;  %v1610_v35 = vpop.f32.mrb[17].mxu1 }
 0x302   :  { %v1611_v36 = vadd.f32 %v1610_v35, %v1122_v32  ;;  %v1612_v37 = vpop.f32.mrb[18].mxu1 }
 0x303   :  { %v1613_v38 = vpop.f32.mrb[19].mxu1 }
 0x304   :  { %v1641_v53 = vcombine.low %v1609_v34, %v1611_v36 }
 0x306   :  { %v1655_v39 = vrot.slane %v1641_v53, %v1630_v8 }
 0x308   :  { %v1656_v40 = vcombine.low %v1648_v28, %v1655_v39 }
 0x30a   :  { %1660 = vst [vmem:[#allocation8 + $0x8] sm:$0xff] %v1656_v40 }
 0x30b   :  { %2159 = shalt.err (!%p2156_p6)
}
 0x30c   :  { %s2160_s22 = scalar_lea.hbm %s2337_s6, 256 }
 0x30d   :  { %p2161_p7 = scmp.ne.s32.totalorder %s2337_s6, %s2160_s22  ;;  %p2164_p8 = scmp.lt.u32.totalorder %s2160_s22, %s2337_s6 }
 0x30f   :  { %p2166_p9 = pnand %p2164_p8, %p2161_p7 }
 0x311   :  { %2169 = shalt.err (!%p2166_p9)
}
 0x312   :  { %1684 = dma.vmem_to_hbm [thread:$0]  %s1682_s7, 256, %s2337_s6, [#allocation5]  }
 0x313   :  { %2174 = dma.done.wait [#allocation5], 256  }
 0x314   :  { %2175 = vsyncadd [#allocation5], 4294967040 }
 0x315   :  { %1692 = vsyncpa [#allocation4], 1 }
 0x316   :  { %1693 = vsyncpa [#allocation7], 1 }
 0x317   :  { %1694 = vsyncpa [#allocation5], 1 }

</bundles_post_ra>
